<compile_context>
chip_gen: v7x
topology: tpu7x:2x2x1
jax: 0.10.0
libtpu: 0.0.40
codegen_flags: <defaults>
</compile_context>

<pallas_src>
import functools

import jax
import jax.numpy as jnp
from jax import lax
from jax.experimental import pallas as pl
from jax.experimental.pallas import tpu as pltpu


_LN_EPS = 1e-5               # PyTorch nn.LayerNorm default eps
_MIN_PALLAS_BATCH = 512      # below this, fused XLA wins over kernel launch/pipeline overhead
_BF16_AUTO_MIN_BATCH = 4096  # auto-enable bf16 streaming of x / matmul weights above this


def _round_up(x: int, m: int) -> int:
    return ((x + m - 1) // m) * m


def _reference_math(x, w1, b1, w2, b2, ln_w, ln_b):
    """Plain jnp forward (exact module semantics). Used as small-batch fast path and for tests."""
    h = jnp.maximum(x @ w1 + b1, 0.0)
    y = h @ w2 + b2
    mean = jnp.mean(y, axis=-1, keepdims=True)
    var = jnp.mean((y - mean) ** 2, axis=-1, keepdims=True)
    y = (y - mean) / jnp.sqrt(var + _LN_EPS)
    y = y * ln_w + ln_b
    return jnp.maximum(y, 0.0)


def _make_kernel(d_mid_p: int, hidden_p: int):
    """Kernel over lane-packed tiles.

    x_ref    : (tile_g, G*d_in)            streamed batch tile (G rows packed per lane row)
    w1_ref   : (G*d_in, G*d_mid)           block-diagonal W1 (resident)
    w2_ref   : (G*d_mid, G*hidden)         block-diagonal, mean-folded W2 (resident)
    ones_ref : (G*hidden, G*hidden)        block-diagonal ones/hidden (resident, f32)
    p_ref    : (4, max(G*d_mid, G*hidden)) packed b1 / centered b2 / ln_w / ln_b (resident, f32)
    o_ref    : (tile_g, G*hidden)          output tile
    """
    def kernel(x_ref, w1_ref, w2_ref, ones_ref, p_ref, o_ref):
        b1v = p_ref[0:1, :d_mid_p]
        b2v = p_ref[1:2, :hidden_p]
        lnw = p_ref[2:3, :hidden_p]
        lnb = p_ref[3:4, :hidden_p]

        # Linear 1 + ReLU (MXU, f32 accumulation; elementwise math stays f32 -> OK on v5e too).
        h = jnp.dot(x_ref[...], w1_ref[...], preferred_element_type=jnp.float32)
        h = jnp.maximum(h + b1v, 0.0)

        # Linear 2 with LN mean-subtraction pre-folded into w2/b2 -> yc is already block-centered.
        yc = jnp.dot(h.astype(w2_ref.dtype), w2_ref[...],
                     preferred_element_type=jnp.float32) + b2v

        # LayerNorm variance: per-32-lane-block mean of yc^2 via one MXU matmul with the
        # block-diagonal ones/hidden matrix (broadcast back across each block's lanes).
        var = jnp.dot(yc * yc, ones_ref[...], preferred_element_type=jnp.float32)
        y = yc * lax.rsqrt(var + _LN_EPS)
        y = y * lnw + lnb

        # Final ReLU; store is fully lane-dense (G*hidden == 128 for this module).
        o_ref[...] = jnp.maximum(y, 0.0).astype(o_ref.dtype)

    return kernel


@functools.partial(jax.jit, static_argnames=("tile_rows", "compute_dtype", "use_pallas"))
def static_feature_layer(x, w1, b1, w2, b2, ln_w, ln_b, *,
                         tile_rows=8192, compute_dtype=None, use_pallas=None):
    """Forward pass of StaticFeatureLayer.

    x : (B, static_feature_dim * retrieval_number); weights stored (in, out) so kernel does x @ W.
    tile_rows     : target batch rows per grid step (amortizes per-step pipeline overhead).
    compute_dtype : streaming dtype for x and matmul weights (None = auto: bf16 for very large B);
                    accumulation, LayerNorm math and the OUTPUT stay in the input dtype.
    use_pallas    : None = auto (Pallas for B >= 512), True/False to force.
    """
    B, d_in = x.shape
    d_mid = w1.shape[1]
    hidden = w2.shape[1]
    out_dtype = x.dtype

    if use_pallas is None:
        use_pallas = B >= _MIN_PALLAS_BATCH
    if not use_pallas:
        # Tiny-batch fast path: fused XLA beats kernel launch + padding overhead.
        return _reference_math(x, w1, b1, w2, b2, ln_w, ln_b)

    if compute_dtype is None:
        compute_dtype = jnp.bfloat16 if B >= _BF16_AUTO_MIN_BATCH else x.dtype

    # Fold LayerNorm mean-subtraction into the second linear (exact):
    #   y - mean_j(y) == h @ (W2 - rowmean(W2)) + (b2 - mean(b2))
    w2c = (w2 - jnp.mean(w2, axis=1, keepdims=True)).astype(jnp.float32)
    b2c = (b2 - jnp.mean(b2)).astype(jnp.float32)

    # Lane-dense group factor: pack G batch rows per 128-lane row so that G*hidden == 128.
    if 0 < hidden < 128 and 128 % hidden == 0:
        G = 128 // hidden
        G = max(1, min(G, max(1, 1024 // max(d_in, d_mid, hidden))))
    else:
        G = 1  # fallback: unpacked layout (kernel is identical, just narrower lanes)

    d_in_p, d_mid_p, hidden_p = G * d_in, G * d_mid, G * hidden

    # Block-diagonal weights (G copies on the diagonal) and block-diag ones/hidden for variance.
    eye_g = jnp.eye(G, dtype=jnp.float32)
    w1_bd = jnp.kron(eye_g, w1.astype(jnp.float32))
    w2_bd = jnp.kron(eye_g, w2c)
    ones_bd = jnp.kron(eye_g, jnp.full((hidden, hidden), 1.0 / hidden, jnp.float32))

    # Pack the four small per-feature vectors (tiled xG) into one resident (4, P) f32 array.
    pmax = max(d_mid_p, hidden_p)
    params = jnp.zeros((4, pmax), jnp.float32)
    params = params.at[0, :d_mid_p].set(jnp.tile(b1.reshape(-1).astype(jnp.float32), G))
    params = params.at[1, :hidden_p].set(jnp.tile(b2c.reshape(-1), G))
    params = params.at[2, :hidden_p].set(jnp.tile(ln_w.reshape(-1).astype(jnp.float32), G))
    params = params.at[3, :hidden_p].set(jnp.tile(ln_b.reshape(-1).astype(jnp.float32), G))

    # Streaming dtype for the O(B) traffic and the MXU weights.
    x_s = x.astype(compute_dtype)
    w1_bd = w1_bd.astype(compute_dtype)
    w2_bd = w2_bd.astype(compute_dtype)

    # Sublane-packing-aware row granularity (bf16 packs 2 rows/sublane -> multiples of 16).
    itemsize = jnp.dtype(compute_dtype).itemsize
    row_mult = {4: 8, 2: 16, 1: 32}.get(itemsize, 8)

    # Grid over packed rows ("groups" of G batch rows each).
    num_groups = pl.cdiv(B, G)
    tile_g = max(row_mult,
                 min(max(tile_rows // G, row_mult), _round_up(num_groups, row_mult)))
    tile_g = _round_up(tile_g, row_mult)
    # v7x megacore: keep >= 2 grid steps (so both TensorCores get work) when there is enough work;
    # costs ~nothing on single-TC v5e/v6e.
    if num_groups >= 256:
        tile_g = min(tile_g, _round_up(pl.cdiv(num_groups, 2), row_mult))

    num_tiles = pl.cdiv(num_groups, tile_g)
    g_pad = num_tiles * tile_g
    b_pad = g_pad * G
    if b_pad != B:
        x_s = jnp.pad(x_s, ((0, b_pad - B), (0, 0)))
    x_packed = x_s.reshape(g_pad, d_in_p)  # contiguous reshape, no data movement

    kernel = _make_kernel(d_mid_p, hidden_p)

    out_packed = pl.pallas_call(
        kernel,
        out_shape=jax.ShapeDtypeStruct((g_pad, hidden_p), out_dtype),
        grid_spec=pltpu.PrefetchScalarGridSpec(
            num_scalar_prefetch=0,
            grid=(num_tiles,),
            in_specs=[
                pl.BlockSpec((tile_g, d_in_p), lambda i: (i, 0)),      # streamed packed batch tile
                pl.BlockSpec((d_in_p, d_mid_p), lambda i: (0, 0)),     # resident block-diag W1
                pl.BlockSpec((d_mid_p, hidden_p), lambda i: (0, 0)),   # resident block-diag W2c
                pl.BlockSpec((hidden_p, hidden_p), lambda i: (0, 0)),  # resident ones/hidden
                pl.BlockSpec((4, pmax), lambda i: (0, 0)),             # resident packed params
            ],
            out_specs=pl.BlockSpec((tile_g, hidden_p), lambda i: (i, 0)),
        ),
        compiler_params=pltpu.CompilerParams(
            dimension_semantics=("parallel",),   # v7x: shard batch tiles over both TensorCores
            vmem_limit_bytes=32 * 1024 * 1024,   # explicit budget; tiles are ~MiB-scale anyway
        ),
    )(x_packed, w1_bd, w2_bd, ones_bd, params)

    # Unpack (g_pad, G*hidden) -> (b_pad, hidden) (contiguous) and drop batch padding.
    return out_packed.reshape(b_pad, hidden)[:B]


if __name__ == "__main__":
    # Module hyperparameters (small, consistent with __init__).
    retrieval_number = 8
    static_feature_dim = 4
    hidden_dim = 32

    d_in = static_feature_dim * retrieval_number          # 32
    d_mid = static_feature_dim * (retrieval_number // 2)  # 16

    key = jax.random.PRNGKey(0)
    kx, k1, k2, k3, k4, kx2 = jax.random.split(key, 6)

    # Deterministic parameter init (PyTorch-Linear-like uniform bounds).
    lim1 = 1.0 / (d_in ** 0.5)
    w1 = jax.random.uniform(k1, (d_in, d_mid), jnp.float32, -lim1, lim1)
    b1 = jax.random.uniform(k2, (1, d_mid), jnp.float32, -lim1, lim1)
    lim2 = 1.0 / (d_mid ** 0.5)
    w2 = jax.random.uniform(k3, (d_mid, hidden_dim), jnp.float32, -lim2, lim2)
    b2 = jax.random.uniform(k4, (1, hidden_dim), jnp.float32, -lim2, lim2)
    ln_w = jnp.ones((1, hidden_dim), jnp.float32)
    ln_b = jnp.zeros((1, hidden_dim), jnp.float32)

    # 1) Small (module-consistent) batch, forcing the Pallas path; exact f32 check.
    x_small = jax.random.normal(kx, (2, d_in), dtype=jnp.float32)
    ref_small = _reference_math(x_small, w1, b1, w2, b2, ln_w, ln_b)
    out_small = jax.block_until_ready(
        static_feature_layer(x_small, w1, b1, w2, b2, ln_w, ln_b,
                             use_pallas=True, compute_dtype=jnp.float32))
    assert out_small.shape == (2, hidden_dim)
    assert jnp.allclose(out_small, ref_small, atol=1e-4, rtol=1e-4), \
        "f32 small-batch kernel mismatch vs reference"

    # 2) Medium batch, default dispatch (Pallas path, f32 streaming, >=2 grid steps); exact check.
    x_med = jax.random.normal(kx2, (1024, d_in), dtype=jnp.float32)
    ref_med = _reference_math(x_med, w1, b1, w2, b2, ln_w, ln_b)
    out_med = jax.block_until_ready(
        static_feature_layer(x_med, w1, b1, w2, b2, ln_w, ln_b))
    assert out_med.shape == (1024, hidden_dim)
    assert jnp.allclose(out_med, ref_med, atol=1e-4, rtol=1e-4), \
        "f32 medium-batch kernel mismatch vs reference"

    # 3) Explicit bf16 streaming (f32 accumulation + f32 LayerNorm; output stays f32); loose tol.
    out_bf16 = jax.block_until_ready(
        static_feature_layer(x_med, w1, b1, w2, b2, ln_w, ln_b, compute_dtype=jnp.bfloat16))
    assert out_bf16.dtype == jnp.float32
    assert jnp.allclose(out_bf16, ref_med, atol=5e-2, rtol=5e-2), \
        "bf16-streaming kernel mismatch vs reference"

    print("KERNEL_OK")
</pallas_src>

<mosaic_0001>
module attributes {stable_mosaic.version = 11 : i64} {
  func.func @kernel(%arg0: i32, %arg1: memref<8x128xf32, #tpu.memory_space<vmem>>, %arg2: memref<128x64xf32, #tpu.memory_space<vmem>>, %arg3: memref<64x128xf32, #tpu.memory_space<vmem>>, %arg4: memref<128x128xf32, #tpu.memory_space<vmem>>, %arg5: memref<4x128xf32, #tpu.memory_space<vmem>>, %arg6: memref<8x128xf32, #tpu.memory_space<vmem>>) attributes {dimension_semantics = [#tpu.dimension_semantics<parallel>], iteration_bounds = array<i64: 1>, scalar_prefetch = 0 : i64, scratch_operands = 0 : i64, tpu.core_type = #tpu.core_type<tc>, window_params = [{transform_indices = @transform_0, window_bounds = array<i64: 8, 128>}, {pipeline_mode = #tpu.pipeline_mode<synchronous>, transform_indices = @transform_1, window_bounds = array<i64: 128, 64>}, {pipeline_mode = #tpu.pipeline_mode<synchronous>, transform_indices = @transform_2, window_bounds = array<i64: 64, 128>}, {pipeline_mode = #tpu.pipeline_mode<synchronous>, transform_indices = @transform_3, window_bounds = array<i64: 128, 128>}, {pipeline_mode = #tpu.pipeline_mode<synchronous>, transform_indices = @transform_4, window_bounds = array<i64: 4, 128>}, {transform_indices = @transform_5, window_bounds = array<i64: 8, 128>}]} {
    %c0 = arith.constant 0 : index
    %c0_0 = arith.constant 0 : index
    %0 = vector.load %arg5[%c0, %c0_0] : memref<4x128xf32, #tpu.memory_space<vmem>>, vector<1x64xf32>
    %c1 = arith.constant 1 : index
    %c0_1 = arith.constant 0 : index
    %1 = vector.load %arg5[%c1, %c0_1] : memref<4x128xf32, #tpu.memory_space<vmem>>, vector<1x128xf32>
    %c2 = arith.constant 2 : index
    %c0_2 = arith.constant 0 : index
    %2 = vector.load %arg5[%c2, %c0_2] : memref<4x128xf32, #tpu.memory_space<vmem>>, vector<1x128xf32>
    %c3 = arith.constant 3 : index
    %c0_3 = arith.constant 0 : index
    %3 = vector.load %arg5[%c3, %c0_3] : memref<4x128xf32, #tpu.memory_space<vmem>>, vector<1x128xf32>
    %c0_4 = arith.constant 0 : index
    %c0_5 = arith.constant 0 : index
    %4 = vector.load %arg1[%c0_4, %c0_5] : memref<8x128xf32, #tpu.memory_space<vmem>>, vector<8x128xf32>
    %c0_6 = arith.constant 0 : index
    %c0_7 = arith.constant 0 : index
    %5 = vector.load %arg2[%c0_6, %c0_7] : memref<128x64xf32, #tpu.memory_space<vmem>>, vector<128x64xf32>
    %cst = arith.constant dense<0.000000e+00> : vector<8x64xf32>
    %6 = tpu.matmul %4, %5, %cst {dimension_numbers = #tpu.dot_dimension_numbers<[1], [0], [0], [1], [0, 0, 1, 1], [], []>} : vector<8x128xf32>, vector<128x64xf32>, vector<8x64xf32> -> vector<8x64xf32>
    %7 = vector.broadcast %0 : vector<1x64xf32> to vector<8x64xf32>
    %8 = arith.addf %6, %7 : vector<8x64xf32>
    %cst_8 = arith.constant 0.000000e+00 : f32
    %9 = vector.broadcast %cst_8 : f32 to vector<8x64xf32>
    %10 = arith.maximumf %8, %9 : vector<8x64xf32>
    %c0_9 = arith.constant 0 : index
    %c0_10 = arith.constant 0 : index
    %11 = vector.load %arg3[%c0_9, %c0_10] : memref<64x128xf32, #tpu.memory_space<vmem>>, vector<64x128xf32>
    %cst_11 = arith.constant dense<0.000000e+00> : vector<8x128xf32>
    %12 = tpu.matmul %10, %11, %cst_11 {dimension_numbers = #tpu.dot_dimension_numbers<[1], [0], [0], [1], [0, 0, 1, 1], [], []>} : vector<8x64xf32>, vector<64x128xf32>, vector<8x128xf32> -> vector<8x128xf32>
    %13 = vector.broadcast %1 : vector<1x128xf32> to vector<8x128xf32>
    %14 = arith.addf %12, %13 : vector<8x128xf32>
    %15 = arith.mulf %14, %14 : vector<8x128xf32>
    %c0_12 = arith.constant 0 : index
    %c0_13 = arith.constant 0 : index
    %16 = vector.load %arg4[%c0_12, %c0_13] : memref<128x128xf32, #tpu.memory_space<vmem>>, vector<128x128xf32>
    %cst_14 = arith.constant dense<0.000000e+00> : vector<8x128xf32>
    %17 = tpu.matmul %15, %16, %cst_14 {dimension_numbers = #tpu.dot_dimension_numbers<[1], [0], [0], [1], [0, 0, 1, 1], [], []>} : vector<8x128xf32>, vector<128x128xf32>, vector<8x128xf32> -> vector<8x128xf32>
    %cst_15 = arith.constant 9.99999974E-6 : f32
    %18 = vector.broadcast %cst_15 : f32 to vector<8x128xf32>
    %19 = arith.addf %17, %18 : vector<8x128xf32>
    %20 = math.rsqrt %19 : vector<8x128xf32>
    %21 = arith.mulf %14, %20 : vector<8x128xf32>
    %22 = vector.broadcast %2 : vector<1x128xf32> to vector<8x128xf32>
    %23 = arith.mulf %21, %22 : vector<8x128xf32>
    %24 = vector.broadcast %3 : vector<1x128xf32> to vector<8x128xf32>
    %25 = arith.addf %23, %24 : vector<8x128xf32>
    %cst_16 = arith.constant 0.000000e+00 : f32
    %26 = vector.broadcast %cst_16 : f32 to vector<8x128xf32>
    %27 = arith.maximumf %25, %26 : vector<8x128xf32>
    %c0_17 = arith.constant 0 : index
    %c0_18 = arith.constant 0 : index
    %28 = vector.load %arg6[%c0_17, %c0_18] : memref<8x128xf32, #tpu.memory_space<vmem>>, vector<8x128xf32>
    tpu.vector_store %arg6[%c0_17, %c0_18], %27 {strides = array<i32>} : memref<8x128xf32, #tpu.memory_space<vmem>>, vector<8x128xf32>,
    return
  }
  func.func @transform_0(%arg0: i32) -> (i32, i32) {
    %c0_i32 = arith.constant 0 : i32
    %c0_i32_0 = arith.constant 0 : i32
    return %arg0, %c0_i32 : i32, i32
  }
  func.func @transform_1(%arg0: i32) -> (i32, i32) {
    %c0_i32 = arith.constant 0 : i32
    %c0_i32_0 = arith.constant 0 : i32
    %c0_i32_1 = arith.constant 0 : i32
    return %c0_i32, %c0_i32_0 : i32, i32
  }
  func.func @transform_2(%arg0: i32) -> (i32, i32) {
    %c0_i32 = arith.constant 0 : i32
    %c0_i32_0 = arith.constant 0 : i32
    %c0_i32_1 = arith.constant 0 : i32
    return %c0_i32, %c0_i32_0 : i32, i32
  }
  func.func @transform_3(%arg0: i32) -> (i32, i32) {
    %c0_i32 = arith.constant 0 : i32
    %c0_i32_0 = arith.constant 0 : i32
    %c0_i32_1 = arith.constant 0 : i32
    return %c0_i32, %c0_i32_0 : i32, i32
  }
  func.func @transform_4(%arg0: i32) -> (i32, i32) {
    %c0_i32 = arith.constant 0 : i32
    %c0_i32_0 = arith.constant 0 : i32
    %c0_i32_1 = arith.constant 0 : i32
    return %c0_i32, %c0_i32_0 : i32, i32
  }
  func.func @transform_5(%arg0: i32) -> (i32, i32) {
    %c0_i32 = arith.constant 0 : i32
    %c0_i32_0 = arith.constant 0 : i32
    return %arg0, %c0_i32 : i32, i32
  }
}

</mosaic_0001>

<bundles_post_ra>
// kernel: tile.18
= control target key start
LH: loop header
LB: loop body
LE: loop exit
PB: predicated region body
PF: predicated region fallthrough
CT: control target
= control target key end

     0   :  { %s22_s0 = inlined_call_operand.vmem [shape: f32[16], index: 0, kind: input, shape index: {}]   ;;  %s23_s1 = inlined_call_operand.vmem [shape: f32[4,16], index: 1, kind: output, shape index: {}]  }
   0x1   :  { %v4_v0 = vld [vmem:[%s22_s0] ss:$0 sm:$0xff] }
   0x2   :  { %5 = vst [vmem:[%s23_s1] sm:$0xf] %v4_v0 }

// kernel: tile.22
= control target key start
LH: loop header
LB: loop body
LE: loop exit
PB: predicated region body
PF: predicated region fallthrough
CT: control target
= control target key end

     0   :  { %s22_s0 = inlined_call_operand.vmem [shape: f32[32], index: 0, kind: input, shape index: {}]   ;;  %s23_s1 = inlined_call_operand.vmem [shape: f32[4,32], index: 1, kind: output, shape index: {}]  }
   0x1   :  { %v4_v0 = vld [vmem:[%s22_s0] ss:$0 sm:$0xff] }
   0x2   :  { %5 = vst [vmem:[%s23_s1] sm:$0xf] %v4_v0 }

// kernel: static_feature_layer.1
= control target key start
LH: loop header
LB: loop body
LE: loop exit
PB: predicated region body
PF: predicated region fallthrough
CT: control target
= control target key end

     0   :  { %v509_v0 = vmov 0.0|0.0   ;;  %vm510_vm0 = vmmov 0   ;;  %v511_v4 = vmov 0.0   ;;  %vm128_vm1 = vcmask 523264   ;;  %s706_s1 = inlined_call_operand.vmem [shape: f32[128,64], index: 1, kind: input, shape index: {}]   ;;  %s707_s2 = inlined_call_operand.vmem [shape: f32[64,128], index: 2, kind: input, shape index: {}]   ;;  %s708_s0 = inlined_call_operand.vmem [shape: f32[8,128], index: 0, kind: input, shape index: {}]   ;;  %s709_s4 = inlined_call_operand.vmem [shape: f32[4,128], index: 4, kind: input, shape index: {}]   ;;  %s710_s3 = inlined_call_operand.vmem [shape: f32[128,128], index: 3, kind: input, shape index: {}]   ;;  %s711_s5 = inlined_call_operand.vmem [shape: f32[8,128], index: 5, kind: output, shape index: {}]  }
   0x1   :  { %444 = vmatprep.subr.bf16.mxu0 %v509_v0  ;;  %v25_v1 = vld [vmem:[%s706_s1] sm:$0xff]  ;;  %v26_v2 = vld [vmem:[%s706_s1 + $0x8] sm:$0xff]  ;;  %v27_v3 = vld [vmem:[%s706_s1 + $0x10] sm:$0xff]  ;;  %387 = vmatprep.mubr.msk.f32.mxu0 %vm510_vm0, %v511_v4 }
   0x2   :  { %v445_v5 = vpack.c.bf16 %v26_v2, %v25_v1  ;;  %v28_v6 = vld [vmem:[%s706_s1 + $0x18] sm:$0xff]  ;;  %468 = vmatprep.subr.bf16.mxu1 %v509_v0  ;;  %406 = vmatprep.mubr.msk.f32.mxu1 %vm510_vm0, %v511_v4  ;;  %v29_v8 = vld [vmem:[%s706_s1 + $0x20] sm:$0xff]  ;;  %v30_v9 = vld [vmem:[%s706_s1 + $0x28] sm:$0xff] }
   0x3   :  { %v448_v7 = vpack.c.bf16 %v28_v6, %v27_v3  ;;  %v116_v10 = vld [vmem:[%s707_s2] sm:$0xff]  ;;  %v117_v11 = vld [vmem:[%s707_s2 + $0x8] sm:$0xff]  ;;  %v118_v12 = vld [vmem:[%s707_s2 + $0x10] sm:$0xff]  ;;  %v451_v14 = vpack.c.bf16 %v30_v9, %v29_v8 }
   0x4   :  { %446 = vmatpush3.bf16.msra.mxu0 %v445_v5  ;;  %v119_v13 = vld [vmem:[%s707_s2 + $0x18] sm:$0xff]  ;;  %v469_v15 = vpack.c.bf16 %v117_v11, %v116_v10  ;;  %v31_v16 = vld [vmem:[%s706_s1 + $0x30] sm:$0xff]  ;;  %v120_v19 = vld [vmem:[%s707_s2 + $0x20] sm:$0xff] }
   0x5   :  { %447 = vmatprep.subr.bf16.mxu0 %v509_v0  ;;  %v32_v17 = vld [vmem:[%s706_s1 + $0x38] sm:$0xff]  ;;  %v472_v18 = vpack.c.bf16 %v119_v13, %v118_v12  ;;  %v121_v20 = vld [vmem:[%s707_s2 + $0x28] sm:$0xff]  ;;  %v33_v22 = vld [vmem:[%s706_s1 + $0x40] sm:$0xff] }
   0x6   :  { %470 = vmatpush3.bf16.msra.mxu1 %v469_v15  ;;  %v454_v21 = vpack.c.bf16 %v32_v17, %v31_v16  ;;  %v34_v23 = vld [vmem:[%s706_s1 + $0x48] sm:$0xff]  ;;  %v475_v24 = vpack.c.bf16 %v121_v20, %v120_v19  ;;  %v35_v26 = vld [vmem:[%s706_s1 + $0x50] sm:$0xff]  ;;  %v36_v27 = vld [vmem:[%s706_s1 + $0x58] sm:$0xff] }
   0x7   :  { %471 = vmatprep.subr.bf16.mxu1 %v509_v0  ;;  %v457_v25 = vpack.c.bf16 %v34_v23, %v33_v22  ;;  %v460_v28 = vpack.c.bf16 %v36_v27, %v35_v26  ;;  %v37_v29 = vld [vmem:[%s706_s1 + $0x60] sm:$0xff]  ;;  %v38_v30 = vld [vmem:[%s706_s1 + $0x68] sm:$0xff]  ;;  %v39_v32 = vld [vmem:[%s706_s1 + $0x70] sm:$0xff] }
   0x8   :  { %449 = vmatpush3.bf16.msra.mxu0 %v448_v7  ;;  %v463_v31 = vpack.c.bf16 %v38_v30, %v37_v29  ;;  %v40_v33 = vld [vmem:[%s706_s1 + $0x78] sm:$0xff]  ;;  %v24_v35 = vld [vmem:[%s708_s0] sm:$0xff]  ;;  %v122_v36 = vld [vmem:[%s707_s2 + $0x30] sm:$0xff] }
   0x9   :  { %450 = vmatprep.subr.bf16.mxu0 %v509_v0  ;;  %v466_v34 = vpack.c.bf16 %v40_v33, %v39_v32  ;;  %v123_v37 = vld [vmem:[%s707_s2 + $0x38] sm:$0xff]  ;;  %v307_v39 = vld [vmem:[%s709_s4] ss:$0 sm:$0xff]  ;;  %v204_v41 = vld [vmem:[%s710_s3 + $0x8] sm:$0xff] }
   0xa   :  { %473 = vmatpush3.bf16.msra.mxu1 %v472_v18  ;;  %v478_v38 = vpack.c.bf16 %v123_v37, %v122_v36  ;;  %v203_v40 = vld [vmem:[%s710_s3] sm:$0xff]  ;;  %v205_v47 = vld [vmem:[%s710_s3 + $0x10] sm:$0xff]  ;;  %v206_v48 = vld [vmem:[%s710_s3 + $0x18] sm:$0xff] }
   0xb   :  { %474 = vmatprep.subr.bf16.mxu1 %v509_v0  ;;  %v481_v45 = vpack.c.bf16 %v204_v41, %v203_v40  ;;  %v484_v49 = vpack.c.bf16 %v206_v48, %v205_v47  ;;  %v207_v50 = vld [vmem:[%s710_s3 + $0x20] sm:$0xff]  ;;  %v208_v51 = vld [vmem:[%s710_s3 + $0x28] sm:$0xff]  ;;  %v209_v53 = vld [vmem:[%s710_s3 + $0x30] sm:$0xff] }
   0xc   :  { %452 = vmatpush3.bf16.msra.mxu0 %v451_v14  ;;  %v487_v52 = vpack.c.bf16 %v208_v51, %v207_v50  ;;  %v210_v54 = vld [vmem:[%s710_s3 + $0x38] sm:$0xff]  ;;  %v211_v56 = vld [vmem:[%s710_s3 + $0x40] sm:$0xff]  ;;  %v212_v57 = vld [vmem:[%s710_s3 + $0x48] sm:$0xff] }
   0xd   :  { %453 = vmatprep.subr.bf16.mxu0 %v509_v0  ;;  %v490_v55 = vpack.c.bf16 %v210_v54, %v209_v53  ;;  %v493_v58 = vpack.c.bf16 %v212_v57, %v211_v56  ;;  %v213_v59 = vld [vmem:[%s710_s3 + $0x50] sm:$0xff]  ;;  %v214_v60 = vld [vmem:[%s710_s3 + $0x58] sm:$0xff]  ;;  %v215_v62 = vld [vmem:[%s710_s3 + $0x60] sm:$0xff] }
   0xe   :  { %476 = vmatpush3.bf16.msra.mxu1 %v475_v24  ;;  %v496_v61 = vpack.c.bf16 %v214_v60, %v213_v59  ;;  %v216_v63 = vld [vmem:[%s710_s3 + $0x68] sm:$0xff]  ;;  %v217_v2 = vld [vmem:[%s710_s3 + $0x70] sm:$0xff]  ;;  %v218_v3 = vld [vmem:[%s710_s3 + $0x78] sm:$0xff] }
   0xf   :  { %477 = vmatprep.subr.bf16.mxu1 %v509_v0  ;;  %v499_v1 = vpack.c.bf16 %v216_v63, %v215_v62  ;;  %v308_v5 = vld [vmem:[%s709_s4 + $0x1] ss:$0 sm:$0xff]  ;;  %v310_v13 = vld [vmem:[%s709_s4 + $0x2] ss:$0 sm:$0xff]  ;;  %v311_v15 = vld [vmem:[%s709_s4 + $0x3] ss:$0 sm:$0xff] }
  0x10   :  { %455 = vmatpush3.bf16.msra.mxu0 %v454_v21 }
  0x11   :  { %456 = vmatprep.subr.bf16.mxu0 %v509_v0 }
  0x12   :  { %479 = vmatpush3.bf16.msra.mxu1 %v478_v38 }
  0x13   :  { %480 = vmatprep.subr.bf16.mxu1 %v509_v0 }
  0x14   :  { %458 = vmatpush3.bf16.msra.mxu0 %v457_v25 }
  0x15   :  { %459 = vmatprep.subr.bf16.mxu0 %v509_v0 }
  0x18   :  { %461 = vmatpush3.bf16.msra.mxu0 %v460_v28 }
  0x19   :  { %462 = vmatprep.subr.bf16.mxu0 %v509_v0 }
  0x1c   :  { %464 = vmatpush3.bf16.msra.mxu0 %v463_v31 }
  0x1d   :  { %465 = vmatprep.subr.bf16.mxu0 %v509_v0 }
  0x20   :  { %467 = vmatpush3.bf16.msra.mxu0 %v466_v34 }
  0x23   :  { %388 = vmatmul.mubr.f32.vlgmr.msra.gmra.mrb[0].mxu0 %v24_v35 }
  0xf6   :  { %v111_v42 = vpop.f32.mrb[0].mxu0 }
  0xf7   :  { %v112_v43 = vadd.f32 %v307_v39, %v111_v42  ;;  %v389_v44 = vpop.f32.mrb[1].mxu0 }
  0xf9   :  { %v115_v46 = vmax.f32 %v112_v43, 0.0 }
  0xfb   :  { %407 = vmatmul.mubr.msk.f32.vlgmr.msra.gmra.mrb[0].mxu1 %vm128_vm1, %v115_v46 }
  0xfc   :  { %482 = vmatpush3.bf16.msra.mxu1 %v481_v45  ;;  %441 = vmatprep.mubr.msk.f32.mxu1 %vm510_vm0, %v511_v4  ;;  %v502_v4 = vpack.c.bf16 %v218_v3, %v217_v2 }
  0xfd   :  { %483 = vmatprep.subr.bf16.mxu1 %v509_v0 }
 0x100   :  { %485 = vmatpush3.bf16.msra.mxu1 %v484_v49 }
 0x101   :  { %486 = vmatprep.subr.bf16.mxu1 %v509_v0 }
 0x104   :  { %488 = vmatpush3.bf16.msra.mxu1 %v487_v52 }
 0x105   :  { %489 = vmatprep.subr.bf16.mxu1 %v509_v0 }
 0x108   :  { %491 = vmatpush3.bf16.msra.mxu1 %v490_v55 }
 0x109   :  { %492 = vmatprep.subr.bf16.mxu1 %v509_v0 }
 0x10c   :  { %494 = vmatpush3.bf16.msra.mxu1 %v493_v58 }
 0x10d   :  { %495 = vmatprep.subr.bf16.mxu1 %v509_v0 }
 0x110   :  { %497 = vmatpush3.bf16.msra.mxu1 %v496_v61 }
 0x111   :  { %498 = vmatprep.subr.bf16.mxu1 %v509_v0 }
 0x114   :  { %500 = vmatpush3.bf16.msra.mxu1 %v499_v1 }
 0x115   :  { %501 = vmatprep.subr.bf16.mxu1 %v509_v0 }
 0x118   :  { %503 = vmatpush3.bf16.msra.mxu1 %v502_v4 }
 0x1ce   :  { %v198_v6 = vpop.f32.mrb[0].mxu1 }
 0x1cf   :  { %v199_v7 = vadd.f32 %v308_v5, %v198_v6  ;;  %v408_v8 = vpop.f32.mrb[1].mxu1 }
 0x1d1   :  { %v202_v9 = vmul.f32 %v199_v7, %v199_v7 }
 0x1d3   :  { %442 = vmatmul.mubr.f32.vlgmr.msra.gmra.mrb[2].mxu1 %v202_v9 }
 0x2a6   :  { %v285_v0 = vpop.f32.mrb[2].mxu1 }
 0x2a7   :  { %v286_v10 = vadd.f32 1e-05, %v285_v0  ;;  %v443_v11 = vpop.f32.mrb[3].mxu1 }
 0x2a9   :  { %507 = vrsqrt.f32 %v286_v10 }
 0x2b3   :  { %v508_v12 = vpop.eup %507 }
 0x2b4   :  { %v290_v14 = vmul.f32 %v508_v12, %v199_v7 }
 0x2b6   :  { %v295_v16 = vmul.f32 %v310_v13, %v290_v14 }
 0x2b8   :  { %v300_v17 = vadd.f32 %v311_v15, %v295_v16 }
 0x2ba   :  { %v301_v18 = vmax.f32 %v300_v17, 0.0 }
 0x2bc   :  { %302 = vst [vmem:[%s711_s5] sm:$0xff] %v301_v18 }

</bundles_post_ra>
